<compile_context>
chip_gen: v7x
topology: tpu7x:2x2x1
jax: 0.10.0
libtpu: 0.0.40
codegen_flags: <defaults>
</compile_context>

<pallas_src>
import functools

import numpy as np
import jax
import jax.numpy as jnp
from jax import lax
from jax.experimental import pallas as pl
from jax.experimental.pallas import tpu as pltpu

IN_EPS = 1e-5
BN_EPS = 1e-5


# ----------------------------- Pallas kernel ---------------------------------

def _ibn_a_kernel(x_ref, p_ref, o_ref, *, eps):
    """Fused IBN_a for one (sample, channel-tile) block.

    x_ref: (HW, TC)   one sample, full spatial, TC-channel tile
    p_ref: (4, TC)    rows: [in_gamma, in_beta, bn_scale, bn_bias]
                      (IN rows are zero on BN channels and vice versa)
    o_ref: (HW, TC)
    """
    x = x_ref[...].astype(jnp.float32)                       # (HW, TC)

    # Per-(sample, channel) instance statistics over the spatial axis.
    mu = jnp.mean(x, axis=0, keepdims=True)                  # (1, TC)
    var = jnp.mean(jnp.square(x - mu), axis=0, keepdims=True)  # biased, as torch

    in_w = p_ref[0:1, :]        # IN gamma  (0 on BN channels)
    in_b = p_ref[1:2, :]        # IN beta   (0 on BN channels)
    bn_s = p_ref[2:3, :]        # folded BN scale (0 on IN channels)
    bn_b = p_ref[3:4, :]        # folded BN bias  (0 on IN channels)

    in_scale = in_w * lax.rsqrt(var + eps)                   # 0 on BN channels
    scale = in_scale + bn_s
    bias = in_b - mu * in_scale + bn_b
    o_ref[...] = (x * scale + bias).astype(o_ref.dtype)


# ----------------------------- wrapper ----------------------------------------

def ibn_a_forward(x_nchw, params):
    """IBN_a forward.  x_nchw: (N, C, H, W) PyTorch-convention input."""
    N, C, H, W = x_nchw.shape
    half = C // 2                       # IN channels; BN channels = C - half
    assert C % 2 == 0, "IBN_a used with even channel count"

    # Layout glue: NCHW -> NHWC -> (N, H*W, C) so channels land on lanes.
    x = jnp.transpose(x_nchw, (0, 2, 3, 1)).reshape(N, H * W, C)

    # Fold the (inference-mode) BatchNorm into per-channel scale/bias, and
    # zero-extend IN/BN params to full channel width so the kernel needs no
    # channel-split, masks or concat.
    bn_scale = params['bn_gamma'] / jnp.sqrt(params['bn_var'] + BN_EPS)
    bn_bias = params['bn_beta'] - params['bn_mean'] * bn_scale
    zeros_bn = jnp.zeros((C - half,), jnp.float32)
    zeros_in = jnp.zeros((half,), jnp.float32)
    p = jnp.stack([
        jnp.concatenate([params['in_weight'].astype(jnp.float32), zeros_bn]),
        jnp.concatenate([params['in_bias'].astype(jnp.float32), zeros_bn]),
        jnp.concatenate([zeros_in, bn_scale.astype(jnp.float32)]),
        jnp.concatenate([zeros_in, bn_bias.astype(jnp.float32)]),
    ], axis=0)                                                # (4, C)

    HW = H * W
    # Channel tile: lane-dense 128-wide tiles when possible, else full C
    # (full-dim blocks are always legal).  Spatial stays whole per block
    # because the instance-norm reduction needs the full H*W of a sample.
    TILE_C = 128 if (C % 128 == 0) else C
    grid = (N, C // TILE_C)

    out = pl.pallas_call(
        functools.partial(_ibn_a_kernel, eps=IN_EPS),
        out_shape=jax.ShapeDtypeStruct((N, HW, C), x_nchw.dtype),
        grid_spec=pltpu.PrefetchScalarGridSpec(
            num_scalar_prefetch=0,
            grid=grid,
            in_specs=[
                # activation: one sample, full spatial, one channel tile
                pl.BlockSpec((None, HW, TILE_C), lambda n, c: (n, 0, c)),
                # per-channel params: grid-invariant along n (stays resident)
                pl.BlockSpec((4, TILE_C), lambda n, c: (0, c)),
            ],
            out_specs=pl.BlockSpec((None, HW, TILE_C), lambda n, c: (n, 0, c)),
        ),
        compiler_params=pltpu.CompilerParams(
            dimension_semantics=("parallel", "parallel")),
    )(x, p)

    # Back to PyTorch-convention NCHW.
    return jnp.transpose(out.reshape(N, H, W, C), (0, 3, 1, 2))


# ----------------------------- pure-JAX reference -----------------------------

def ibn_a_reference(x_nchw, params):
    N, C, H, W = x_nchw.shape
    half = C // 2
    x_in = x_nchw[:, :half]                                   # (N, half, H, W)
    x_bn = x_nchw[:, half:]                                   # (N, C-half, H, W)

    mu = jnp.mean(x_in, axis=(2, 3), keepdims=True)
    var = jnp.mean(jnp.square(x_in - mu), axis=(2, 3), keepdims=True)
    out1 = ((x_in - mu) / jnp.sqrt(var + IN_EPS)
            * params['in_weight'].reshape(1, half, 1, 1)
            + params['in_bias'].reshape(1, half, 1, 1))

    scale = params['bn_gamma'] / jnp.sqrt(params['bn_var'] + BN_EPS)
    bias = params['bn_beta'] - params['bn_mean'] * scale
    out2 = (x_bn * scale.reshape(1, C - half, 1, 1)
            + bias.reshape(1, C - half, 1, 1))

    return jnp.concatenate([out1, out2], axis=1)


# ----------------------------- main --------------------------------------------

if __name__ == "__main__":
    planes = 4
    half = planes // 2

    key = jax.random.PRNGKey(0)
    key, kx, k1, k2, k3, k4, k5, k6 = jax.random.split(key, 8)

    # PyTorch-convention NCHW input.
    x_nchw = jax.random.normal(kx, (2, planes, 16, 16), jnp.float32)

    params = dict(
        in_weight=jax.random.uniform(k1, (half,), minval=0.5, maxval=1.5),
        in_bias=0.1 * jax.random.normal(k2, (half,)),
        bn_gamma=jax.random.uniform(k3, (planes - half,), minval=0.5, maxval=1.5),
        bn_beta=0.1 * jax.random.normal(k4, (planes - half,)),
        bn_mean=0.1 * jax.random.normal(k5, (planes - half,)),
        bn_var=jax.random.uniform(k6, (planes - half,), minval=0.5, maxval=1.5),
    )

    out = ibn_a_forward(x_nchw, params)
    out = jax.block_until_ready(out)

    ref = ibn_a_reference(x_nchw, params)
    np.testing.assert_allclose(np.asarray(out), np.asarray(ref),
                               rtol=1e-4, atol=1e-4)

    print("KERNEL_OK")
</pallas_src>

<mosaic_0001>
module attributes {stable_mosaic.version = 11 : i64} {
  func.func @_ibn_a_kernel(%arg0: i32, %arg1: i32, %arg2: memref<1x256x4xf32, #tpu.memory_space<vmem>>, %arg3: memref<4x4xf32, #tpu.memory_space<vmem>>, %arg4: memref<1x256x4xf32, #tpu.memory_space<vmem>>) attributes {dimension_semantics = [#tpu.dimension_semantics<parallel>, #tpu.dimension_semantics<parallel>], iteration_bounds = array<i64: 2, 1>, scalar_prefetch = 0 : i64, scratch_operands = 0 : i64, tpu.core_type = #tpu.core_type<tc>, window_params = [{transform_indices = @transform_0, window_bounds = array<i64: 1, 256, 4>}, {transform_indices = @transform_1, window_bounds = array<i64: 4, 4>}, {transform_indices = @transform_2, window_bounds = array<i64: 1, 256, 4>}]} {
    %c0 = arith.constant 0 : index
    %c0_0 = arith.constant 0 : index
    %c0_1 = arith.constant 0 : index
    %0 = vector.load %arg2[%c0, %c0_0, %c0_1] : memref<1x256x4xf32, #tpu.memory_space<vmem>>, vector<1x256x4xf32>
    %1 = vector.shape_cast %0 : vector<1x256x4xf32> to vector<256x4xf32>
    %cst = arith.constant dense<0.000000e+00> : vector<4xf32>
    %2 = vector.multi_reduction <add>, %1, %cst [0] : vector<256x4xf32> to vector<4xf32>
    %3 = vector.shape_cast %2 : vector<4xf32> to vector<1x4xf32>
    %cst_2 = arith.constant 2.560000e+02 : f32
    %4 = vector.broadcast %cst_2 : f32 to vector<1x4xf32>
    %5 = arith.divf %3, %4 : vector<1x4xf32>
    %6 = vector.broadcast %5 : vector<1x4xf32> to vector<256x4xf32>
    %7 = arith.subf %1, %6 : vector<256x4xf32>
    %8 = arith.mulf %7, %7 : vector<256x4xf32>
    %cst_3 = arith.constant dense<0.000000e+00> : vector<4xf32>
    %9 = vector.multi_reduction <add>, %8, %cst_3 [0] : vector<256x4xf32> to vector<4xf32>
    %10 = vector.shape_cast %9 : vector<4xf32> to vector<1x4xf32>
    %cst_4 = arith.constant 2.560000e+02 : f32
    %11 = vector.broadcast %cst_4 : f32 to vector<1x4xf32>
    %12 = arith.divf %10, %11 : vector<1x4xf32>
    %c0_5 = arith.constant 0 : index
    %c0_6 = arith.constant 0 : index
    %13 = vector.load %arg3[%c0_5, %c0_6] : memref<4x4xf32, #tpu.memory_space<vmem>>, vector<1x4xf32>
    %c1 = arith.constant 1 : index
    %c0_7 = arith.constant 0 : index
    %14 = vector.load %arg3[%c1, %c0_7] : memref<4x4xf32, #tpu.memory_space<vmem>>, vector<1x4xf32>
    %c2 = arith.constant 2 : index
    %c0_8 = arith.constant 0 : index
    %15 = vector.load %arg3[%c2, %c0_8] : memref<4x4xf32, #tpu.memory_space<vmem>>, vector<1x4xf32>
    %c3 = arith.constant 3 : index
    %c0_9 = arith.constant 0 : index
    %16 = vector.load %arg3[%c3, %c0_9] : memref<4x4xf32, #tpu.memory_space<vmem>>, vector<1x4xf32>
    %cst_10 = arith.constant 9.99999974E-6 : f32
    %17 = vector.broadcast %cst_10 : f32 to vector<1x4xf32>
    %18 = arith.addf %12, %17 : vector<1x4xf32>
    %19 = math.rsqrt %18 : vector<1x4xf32>
    %20 = arith.mulf %13, %19 : vector<1x4xf32>
    %21 = arith.addf %20, %15 : vector<1x4xf32>
    %22 = arith.mulf %5, %20 : vector<1x4xf32>
    %23 = arith.subf %14, %22 : vector<1x4xf32>
    %24 = arith.addf %23, %16 : vector<1x4xf32>
    %25 = vector.broadcast %21 : vector<1x4xf32> to vector<256x4xf32>
    %26 = arith.mulf %1, %25 : vector<256x4xf32>
    %27 = vector.broadcast %24 : vector<1x4xf32> to vector<256x4xf32>
    %28 = arith.addf %26, %27 : vector<256x4xf32>
    %c0_11 = arith.constant 0 : index
    %c0_12 = arith.constant 0 : index
    %c0_13 = arith.constant 0 : index
    %29 = vector.load %arg4[%c0_11, %c0_12, %c0_13] : memref<1x256x4xf32, #tpu.memory_space<vmem>>, vector<1x256x4xf32>
    %30 = vector.shape_cast %29 : vector<1x256x4xf32> to vector<256x4xf32>
    %31 = vector.shape_cast %28 : vector<256x4xf32> to vector<1x256x4xf32>
    tpu.vector_store %arg4[%c0_11, %c0_12, %c0_13], %31 {strides = array<i32>} : memref<1x256x4xf32, #tpu.memory_space<vmem>>, vector<1x256x4xf32>,
    return
  }
  func.func @transform_0(%arg0: i32, %arg1: i32) -> (i32, i32, i32) {
    %c0_i32 = arith.constant 0 : i32
    %c0_i32_0 = arith.constant 0 : i32
    return %arg0, %c0_i32, %arg1 : i32, i32, i32
  }
  func.func @transform_1(%arg0: i32, %arg1: i32) -> (i32, i32) {
    %c0_i32 = arith.constant 0 : i32
    %c0_i32_0 = arith.constant 0 : i32
    return %c0_i32, %arg1 : i32, i32
  }
  func.func @transform_2(%arg0: i32, %arg1: i32) -> (i32, i32, i32) {
    %c0_i32 = arith.constant 0 : i32
    %c0_i32_0 = arith.constant 0 : i32
    return %arg0, %c0_i32, %arg1 : i32, i32, i32
  }
}

</mosaic_0001>

<bundles_post_ra>
// kernel: tpu_custom_call.1
= control target key start
LH: loop header
LB: loop body
LE: loop exit
PB: predicated region body
PF: predicated region fallthrough
CT: control target
= control target key end

     0   :  { %s723_s9 = smov 0   ;;  %s725_s10 = smov 0   ;;  %s1202_s0 = inlined_call_operand.vmem [shape: f32[2,256,4], index: 0, kind: input, shape index: {}]   ;;  %s1203_s1 = inlined_call_operand.vmem [shape: f32[4,4], index: 1, kind: input, shape index: {}]   ;;  %s1204_s2 = inlined_call_operand.vmem [shape: f32[2,256,4], index: 2, kind: output, shape index: {}]  }
   0x1   :  { %s727_s11 = smov 0  }
   0x2 LB: > { %s24_s12 = sadd.s32 1, %s702_s10  ;;  %p649_p0 = scmp.ge.s32.totalorder %s706_s11, 1  ;;  %s706_s11 = sphi %s727_s11, %s12_s11   ;;  %s702_s10 = sphi %s725_s10, %s1206_s10   ;;  %s698_s9 = sphi %s723_s9, %s1205_s9  }
   0x3   : > { %p26_p1 = scmp.ge.s32.totalorder %s24_s12, 2  ;;  %p140_p2 = scmp.lt.s32.totalorder %s706_s11, 3 }
   0x5   : > { %s1208_s12 = smov (%p26_p1, %s24_s12), 0  ;;  %p141_p3 = pnand %p649_p0, %p140_p2 }
   0x6   : > { %p172_p4 = scmp.lt.s32.totalorder (!%p141_p3), %s698_s9, 1  ;;  %vm224_vm0 = vcmask (!%p141_p3), 31744  }
   0x7   : > { %144 = sbr.rel (%p141_p3) target bundleno = 218 (0xda), region = 28 }
   0xe   : > { %s1210_s9 = smov (!%p172_p4, %s698_s9), 1 }
   0xf   : > { %s656_s13 = sshll.u32 %s1210_s9, 8 }
  0x10   : > { %s749_s16 = scalar_lea.vmem %s1202_s0, %s656_s13  ;;  %s1051_s27 = scalar_lea.vmem %s1204_s2, %s656_s13 }
  0x11   : > { %v752_v0 = vld [vmem:[%s749_s16] sm:$0xff]  ;;  %v755_v1 = vld [vmem:[%s749_s16 + $0x8] sm:$0xff]  ;;  %v758_v2 = vld [vmem:[%s749_s16 + $0x10] sm:$0xff] }
  0x12   : > { %v761_v3 = vld [vmem:[%s749_s16 + $0x18] sm:$0xff]  ;;  %v225_v4 = vsel %vm224_vm0, %v752_v0, 0.0  ;;  %v226_v5 = vsel %vm224_vm0, %v755_v1, 0.0  ;;  %v228_v6 = vsel %vm224_vm0, %v758_v2, 0.0  ;;  %v770_v7 = vld [vmem:[%s749_s16 + $0x20] sm:$0xff]  ;;  %v775_v10 = vld [vmem:[%s749_s16 + $0x28] sm:$0xff] }
  0x13   : > { %v227_v8 = vadd.f32 %v226_v5, %v225_v4  ;;  %v230_v9 = vsel %vm224_vm0, %v761_v3, 0.0  ;;  %v232_v12 = vsel %vm224_vm0, %v770_v7, 0.0  ;;  %v780_v13 = vld [vmem:[%s749_s16 + $0x30] sm:$0xff]  ;;  %v234_v15 = vsel %vm224_vm0, %v775_v10, 0.0  ;;  %v785_v16 = vld [vmem:[%s749_s16 + $0x38] sm:$0xff]  ;;  %v790_v19 = vld [vmem:[%s749_s16 + $0x40] sm:$0xff] }
  0x14   : > { %v236_v18 = vsel %vm224_vm0, %v780_v13, 0.0  ;;  %v238_v21 = vsel %vm224_vm0, %v785_v16, 0.0  ;;  %v795_v22 = vld [vmem:[%s749_s16 + $0x48] sm:$0xff]  ;;  %v240_v24 = vsel %vm224_vm0, %v790_v19, 0.0  ;;  %v800_v25 = vld [vmem:[%s749_s16 + $0x50] sm:$0xff]  ;;  %v805_v28 = vld [vmem:[%s749_s16 + $0x58] sm:$0xff] }
  0x15   : > { %v229_v11 = vadd.f32 %v228_v6, %v227_v8  ;;  %v242_v27 = vsel %vm224_vm0, %v795_v22, 0.0  ;;  %v244_v30 = vsel %vm224_vm0, %v800_v25, 0.0  ;;  %v810_v31 = vld [vmem:[%s749_s16 + $0x60] sm:$0xff]  ;;  %v246_v33 = vsel %vm224_vm0, %v805_v28, 0.0  ;;  %v815_v34 = vld [vmem:[%s749_s16 + $0x68] sm:$0xff]  ;;  %v820_v37 = vld [vmem:[%s749_s16 + $0x70] sm:$0xff] }
  0x16   : > { %v248_v36 = vsel %vm224_vm0, %v810_v31, 0.0  ;;  %v250_v39 = vsel %vm224_vm0, %v815_v34, 0.0  ;;  %v825_v40 = vld [vmem:[%s749_s16 + $0x78] sm:$0xff]  ;;  %v252_v42 = vsel %vm224_vm0, %v820_v37, 0.0  ;;  %v830_v43 = vld [vmem:[%s749_s16 + $0x80] sm:$0xff]  ;;  %v835_v46 = vld [vmem:[%s749_s16 + $0x88] sm:$0xff] }
  0x17   : > { %v231_v14 = vadd.f32 %v230_v9, %v229_v11  ;;  %v254_v45 = vsel %vm224_vm0, %v825_v40, 0.0  ;;  %v256_v48 = vsel %vm224_vm0, %v830_v43, 0.0  ;;  %v840_v49 = vld [vmem:[%s749_s16 + $0x90] sm:$0xff]  ;;  %v258_v51 = vsel %vm224_vm0, %v835_v46, 0.0  ;;  %v845_v52 = vld [vmem:[%s749_s16 + $0x98] sm:$0xff]  ;;  %v850_v55 = vld [vmem:[%s749_s16 + $0xa0] sm:$0xff] }
  0x18   : > { %v260_v54 = vsel %vm224_vm0, %v840_v49, 0.0  ;;  %v262_v57 = vsel %vm224_vm0, %v845_v52, 0.0  ;;  %v855_v58 = vld [vmem:[%s749_s16 + $0xa8] sm:$0xff]  ;;  %v264_v60 = vsel %vm224_vm0, %v850_v55, 0.0  ;;  %v860_v61 = vld [vmem:[%s749_s16 + $0xb0] sm:$0xff]  ;;  %v865_v4 = vld [vmem:[%s749_s16 + $0xb8] sm:$0xff] }
  0x19   : > { %v233_v17 = vadd.f32 %v232_v12, %v231_v14  ;;  %v266_v63 = vsel %vm224_vm0, %v855_v58, 0.0  ;;  %v268_v6 = vsel %vm224_vm0, %v860_v61, 0.0  ;;  %v870_v8 = vld [vmem:[%s749_s16 + $0xc0] sm:$0xff]  ;;  %v270_v11 = vsel %vm224_vm0, %v865_v4, 0.0  ;;  %v875_v12 = vld [vmem:[%s749_s16 + $0xc8] sm:$0xff] }
  0x1b   : > { %v235_v20 = vadd.f32 %v234_v15, %v233_v17  ;;  %v272_v15 = vsel %vm224_vm0, %v870_v8, 0.0  ;;  %v880_v17 = vld [vmem:[%s749_s16 + $0xd0] sm:$0xff] }
  0x1d   : > { %v237_v23 = vadd.f32 %v236_v18, %v235_v20  ;;  %v274_v20 = vsel %vm224_vm0, %v875_v12, 0.0 }
  0x1f   : > { %v239_v26 = vadd.f32 %v238_v21, %v237_v23  ;;  %v885_v21 = vld [vmem:[%s749_s16 + $0xd8] sm:$0xff] }
  0x21   : > { %v241_v29 = vadd.f32 %v240_v24, %v239_v26  ;;  %v276_v24 = vsel %vm224_vm0, %v880_v17, 0.0  ;;  %v890_v26 = vld [vmem:[%s749_s16 + $0xe0] sm:$0xff] }
  0x23   : > { %v243_v32 = vadd.f32 %v242_v27, %v241_v29  ;;  %v278_v29 = vsel %vm224_vm0, %v885_v21, 0.0 }
  0x25   : > { %v245_v35 = vadd.f32 %v244_v30, %v243_v32  ;;  %v895_v30 = vld [vmem:[%s749_s16 + $0xe8] sm:$0xff] }
  0x27   : > { %v247_v38 = vadd.f32 %v246_v33, %v245_v35  ;;  %v280_v33 = vsel %vm224_vm0, %v890_v26, 0.0  ;;  %v900_v35 = vld [vmem:[%s749_s16 + $0xf0] sm:$0xff] }
  0x29   : > { %v249_v41 = vadd.f32 %v248_v36, %v247_v38  ;;  %v282_v38 = vsel %vm224_vm0, %v895_v30, 0.0 }
  0x2b   : > { %v251_v44 = vadd.f32 %v250_v39, %v249_v41  ;;  %v905_v39 = vld [vmem:[%s749_s16 + $0xf8] sm:$0xff] }
  0x2d   : > { %v253_v47 = vadd.f32 %v252_v42, %v251_v44  ;;  %v284_v42 = vsel %vm224_vm0, %v900_v35, 0.0 }
  0x2f   : > { %v255_v50 = vadd.f32 %v254_v45, %v253_v47  ;;  %v286_v45 = vsel %vm224_vm0, %v905_v39, 0.0 }
  0x31   : > { %v257_v53 = vadd.f32 %v256_v48, %v255_v50 }
  0x33   : > { %v259_v56 = vadd.f32 %v258_v51, %v257_v53 }
  0x35   : > { %v261_v59 = vadd.f32 %v260_v54, %v259_v56 }
  0x37   : > { %v263_v62 = vadd.f32 %v262_v57, %v261_v59 }
  0x39   : > { %v265_v5 = vadd.f32 %v264_v60, %v263_v62 }
  0x3b   : > { %v267_v9 = vadd.f32 %v266_v63, %v265_v5 }
  0x3d   : > { %v269_v14 = vadd.f32 %v268_v6, %v267_v9 }
  0x3f   : > { %v271_v18 = vadd.f32 %v270_v11, %v269_v14 }
  0x41   : > { %v273_v23 = vadd.f32 %v272_v15, %v271_v18 }
  0x43   : > { %v275_v27 = vadd.f32 %v274_v20, %v273_v23 }
  0x45   : > { %v277_v32 = vadd.f32 %v276_v24, %v275_v27 }
  0x47   : > { %v279_v36 = vadd.f32 %v278_v29, %v277_v32 }
  0x49   : > { %v281_v41 = vadd.f32 %v280_v33, %v279_v36 }
  0x4b   : > { %v283_v44 = vadd.f32 %v282_v38, %v281_v41 }
  0x4d   : > { %v285_v47 = vadd.f32 %v284_v42, %v283_v44 }
  0x4f   : > { %v287_v48 = vadd.f32 %v286_v45, %v285_v47 }
  0x51   : > { %v288_v50 = vrot.slane %v287_v48, 4 }
  0x53   : > { %v289_v51 = vadd.f32 %v288_v50, %v287_v48 }
  0x55   : > { %v290_v53 = vrot.slane %v289_v51, 2 }
  0x57   : > { %v291_v54 = vadd.f32 %v290_v53, %v289_v51 }
  0x59   : > { %v292_v56 = vrot.slane %v291_v54, 1 }
  0x5b   : > { %v293_v57 = vadd.f32 %v292_v56, %v291_v54 }
  0x5d   : > { %v911_v59 = vmul.f32 0.00390625, %v293_v57 }
  0x5f   : > { %v296_v60 = vsub.f32 %v752_v0, %v911_v59  ;;  %v297_v62 = vsub.f32 %v755_v1, %v911_v59  ;;  %v298_v63 = vsub.f32 %v758_v2, %v911_v59  ;;  %v299_v5 = vsub.f32 %v761_v3, %v911_v59 }
  0x60   : > { %v300_v6 = vsub.f32 %v770_v7, %v911_v59  ;;  %v301_v15 = vsub.f32 %v775_v10, %v911_v59  ;;  %v302_v20 = vsub.f32 %v780_v13, %v911_v59  ;;  %v303_v33 = vsub.f32 %v785_v16, %v911_v59 }
  0x61   : > { %v328_v9 = vmul.f32 %v296_v60, %v296_v60  ;;  %v329_v11 = vmul.f32 %v297_v62, %v297_v62  ;;  %v330_v14 = vmul.f32 %v298_v63, %v298_v63  ;;  %v331_v18 = vmul.f32 %v299_v5, %v299_v5 }
  0x62   : > { %v332_v23 = vmul.f32 %v300_v6, %v300_v6  ;;  %v333_v36 = vmul.f32 %v301_v15, %v301_v15  ;;  %v304_v42 = vsub.f32 %v790_v19, %v911_v59  ;;  %v334_v44 = vmul.f32 %v302_v20, %v302_v20 }
  0x63   : > { %v360_v24 = vsel %vm224_vm0, %v328_v9, 0.0  ;;  %v361_v27 = vsel %vm224_vm0, %v329_v11, 0.0  ;;  %v363_v29 = vsel %vm224_vm0, %v330_v14, 0.0  ;;  %v365_v38 = vsel %vm224_vm0, %v331_v18, 0.0 }
  0x64   : > { %v362_v32 = vadd.f32 %v361_v27, %v360_v24  ;;  %v367_v45 = vsel %vm224_vm0, %v332_v23, 0.0  ;;  %v305_v48 = vsub.f32 %v795_v22, %v911_v59  ;;  %v335_v50 = vmul.f32 %v303_v33, %v303_v33 }
  0x65   : > { %v369_v51 = vsel %vm224_vm0, %v333_v36, 0.0  ;;  %v306_v54 = vsub.f32 %v800_v25, %v911_v59  ;;  %v336_v56 = vmul.f32 %v304_v42, %v304_v42  ;;  %v371_v57 = vsel %vm224_vm0, %v334_v44, 0.0 }
  0x66   : > { %v364_v41 = vadd.f32 %v363_v29, %v362_v32  ;;  %v307_v62 = vsub.f32 %v805_v28, %v911_v59  ;;  %v337_v63 = vmul.f32 %v305_v48, %v305_v48  ;;  %v373_v5 = vsel %vm224_vm0, %v335_v50, 0.0 }
  0x67   : > { %v308_v9 = vsub.f32 %v810_v31, %v911_v59  ;;  %v338_v11 = vmul.f32 %v306_v54, %v306_v54  ;;  %v375_v14 = vsel %vm224_vm0, %v336_v56, 0.0  ;;  %v309_v18 = vsub.f32 %v815_v34, %v911_v59 }
  0x68   : > { %v366_v47 = vadd.f32 %v365_v38, %v364_v41  ;;  %v339_v20 = vmul.f32 %v307_v62, %v307_v62  ;;  %v377_v23 = vsel %vm224_vm0, %v337_v63, 0.0  ;;  %v310_v27 = vsub.f32 %v820_v37, %v911_v59 }
  0x69   : > { %v340_v29 = vmul.f32 %v308_v9, %v308_v9  ;;  %v379_v32 = vsel %vm224_vm0, %v338_v11, 0.0  ;;  %v311_v36 = vsub.f32 %v825_v40, %v911_v59  ;;  %v341_v38 = vmul.f32 %v309_v18, %v309_v18 }
  0x6a   : > { %v368_v53 = vadd.f32 %v367_v45, %v366_v47  ;;  %v381_v41 = vsel %vm224_vm0, %v339_v20, 0.0  ;;  %v312_v44 = vsub.f32 %v830_v43, %v911_v59  ;;  %v342_v45 = vmul.f32 %v310_v27, %v310_v27 }
  0x6b   : > { %v383_v47 = vsel %vm224_vm0, %v340_v29, 0.0  ;;  %v313_v50 = vsub.f32 %v835_v46, %v911_v59  ;;  %v314_v56 = vsub.f32 %v840_v49, %v911_v59  ;;  %v315_v63 = vsub.f32 %v845_v52, %v911_v59 }
  0x6c   : > { %v370_v60 = vadd.f32 %v369_v51, %v368_v53  ;;  %v343_v51 = vmul.f32 %v311_v36, %v311_v36  ;;  %v385_v53 = vsel %vm224_vm0, %v341_v38, 0.0  ;;  %v316_v11 = vsub.f32 %v850_v55, %v911_v59 }
  0x6d   : > { %v317_v20 = vsub.f32 %v855_v58, %v911_v59  ;;  %v318_v29 = vsub.f32 %v860_v61, %v911_v59  ;;  %v319_v38 = vsub.f32 %v865_v4, %v911_v59 }
  0x6e   : > { %v372_v6 = vadd.f32 %v371_v57, %v370_v60  ;;  %v344_v57 = vmul.f32 %v312_v44, %v312_v44  ;;  %v387_v60 = vsel %vm224_vm0, %v342_v45, 0.0  ;;  %v320_v45 = vsub.f32 %v870_v8, %v911_v59 }
  0x70   : > { %v374_v15 = vadd.f32 %v373_v5, %v372_v6  ;;  %v345_v5 = vmul.f32 %v313_v50, %v313_v50  ;;  %v389_v6 = vsel %vm224_vm0, %v343_v51, 0.0  ;;  %v321_v51 = vsub.f32 %v875_v12, %v911_v59 }
  0x72   : > { %v376_v24 = vadd.f32 %v375_v14, %v374_v15  ;;  %v346_v14 = vmul.f32 %v314_v56, %v314_v56  ;;  %v391_v15 = vsel %vm224_vm0, %v344_v57, 0.0  ;;  %v322_v57 = vsub.f32 %v880_v17, %v911_v59 }
  0x74   : > { %v378_v33 = vadd.f32 %v377_v23, %v376_v24  ;;  %v347_v23 = vmul.f32 %v315_v63, %v315_v63  ;;  %v393_v24 = vsel %vm224_vm0, %v345_v5, 0.0  ;;  %v323_v5 = vsub.f32 %v885_v21, %v911_v59 }
  0x76   : > { %v380_v42 = vadd.f32 %v379_v32, %v378_v33  ;;  %v348_v32 = vmul.f32 %v316_v11, %v316_v11  ;;  %v395_v33 = vsel %vm224_vm0, %v346_v14, 0.0  ;;  %v324_v14 = vsub.f32 %v890_v26, %v911_v59 }
  0x78   : > { %v382_v48 = vadd.f32 %v381_v41, %v380_v42  ;;  %v349_v41 = vmul.f32 %v317_v20, %v317_v20  ;;  %v397_v42 = vsel %vm224_vm0, %v347_v23, 0.0  ;;  %v325_v23 = vsub.f32 %v895_v30, %v911_v59 }
  0x7a   : > { %v384_v54 = vadd.f32 %v383_v47, %v382_v48  ;;  %v350_v47 = vmul.f32 %v318_v29, %v318_v29  ;;  %v399_v48 = vsel %vm224_vm0, %v348_v32, 0.0  ;;  %v326_v32 = vsub.f32 %v900_v35, %v911_v59 }
  0x7c   : > { %v386_v62 = vadd.f32 %v385_v53, %v384_v54  ;;  %v351_v53 = vmul.f32 %v319_v38, %v319_v38  ;;  %v401_v54 = vsel %vm224_vm0, %v349_v41, 0.0  ;;  %v327_v41 = vsub.f32 %v905_v39, %v911_v59 }
  0x7e   : > { %v388_v9 = vadd.f32 %v387_v60, %v386_v62  ;;  %v352_v60 = vmul.f32 %v320_v45, %v320_v45  ;;  %v403_v62 = vsel %vm224_vm0, %v350_v47, 0.0  ;;  %v358_v47 = vmul.f32 %v326_v32, %v326_v32  ;;  %v432_v32 = vld [vmem:[%s1203_s1 + $0x2] sm:$0x1] }
  0x80   : > { %v390_v18 = vadd.f32 %v389_v6, %v388_v9  ;;  %v353_v6 = vmul.f32 %v321_v51, %v321_v51  ;;  %v405_v9 = vsel %vm224_vm0, %v351_v53, 0.0  ;;  %v359_v51 = vmul.f32 %v327_v41, %v327_v41 }
  0x82   : > { %v392_v27 = vadd.f32 %v391_v15, %v390_v18  ;;  %v354_v15 = vmul.f32 %v322_v57, %v322_v57  ;;  %v407_v18 = vsel %vm224_vm0, %v352_v60, 0.0  ;;  %v421_v60 = vsel %vm224_vm0, %v359_v51, 0.0 }
  0x84   : > { %v394_v36 = vadd.f32 %v393_v24, %v392_v27  ;;  %v355_v24 = vmul.f32 %v323_v5, %v323_v5  ;;  %v409_v27 = vsel %vm224_vm0, %v353_v6, 0.0 }
  0x86   : > { %v396_v44 = vadd.f32 %v395_v33, %v394_v36  ;;  %v356_v33 = vmul.f32 %v324_v14, %v324_v14  ;;  %v411_v36 = vsel %vm224_vm0, %v354_v15, 0.0 }
  0x88   : > { %v398_v50 = vadd.f32 %v397_v42, %v396_v44  ;;  %v357_v42 = vmul.f32 %v325_v23, %v325_v23  ;;  %v413_v44 = vsel %vm224_vm0, %v355_v24, 0.0  ;;  %v441_v23 = vlaneseq }
  0x8a   : > { %v400_v56 = vadd.f32 %v399_v48, %v398_v50  ;;  %v415_v48 = vsel %vm224_vm0, %v356_v33, 0.0  ;;  %v417_v53 = vsel %vm224_vm0, %v357_v42, 0.0  ;;  %v442_v24 = vshrl.u32 %v441_v23, 7 }
  0x8c   : > { %v402_v63 = vadd.f32 %v401_v54, %v400_v56  ;;  %v419_v56 = vsel %vm224_vm0, %v358_v47, 0.0 }
  0x8e   : > { %v404_v11 = vadd.f32 %v403_v62, %v402_v63 }
  0x90   : > { %v406_v20 = vadd.f32 %v405_v9, %v404_v11 }
  0x92   : > { %v408_v29 = vadd.f32 %v407_v18, %v406_v20 }
  0x94   : > { %v410_v38 = vadd.f32 %v409_v27, %v408_v29  ;;  %v430_v27 = vld [vmem:[%s1203_s1] sm:$0x1] }
  0x96   : > { %v412_v45 = vadd.f32 %v411_v36, %v410_v38  ;;  %v443_v36 = vsub.s32 0, %v442_v24  ;;  %v431_v38 = vld [vmem:[%s1203_s1 + $0x1] sm:$0x1] }
  0x98   : > { %v414_v50 = vadd.f32 %v413_v44, %v412_v45  ;;  %v433_v44 = vld [vmem:[%s1203_s1 + $0x3] sm:$0x1] }
  0x9a   : > { %v416_v54 = vadd.f32 %v415_v48, %v414_v50 }
  0x9c   : > { %v418_v57 = vadd.f32 %v417_v53, %v416_v54 }
  0x9e   : > { %v420_v62 = vadd.f32 %v419_v56, %v418_v57 }
  0xa0   : > { %v422_v63 = vadd.f32 %v421_v60, %v420_v62 }
  0xa2   : > { %v423_v5 = vrot.slane %v422_v63, 4 }
  0xa4   : > { %v424_v6 = vadd.f32 %v423_v5, %v422_v63 }
  0xa6   : > { %v425_v9 = vrot.slane %v424_v6, 2 }
  0xa8   : > { %v426_v11 = vadd.f32 %v425_v9, %v424_v6 }
  0xaa   : > { %v427_v14 = vrot.slane %v426_v11, 1 }
  0xac   : > { %v428_v15 = vadd.f32 %v427_v14, %v426_v11 }
  0xae   : > { %v429_v18 = vmul.f32 0.00390625, %v428_v15 }
  0xb0   : > { %v434_v20 = vadd.f32 1e-05, %v429_v18 }
  0xb2   : > { %682 = vrsqrt.f32 %v434_v20 }
  0xbc   : > { %v683_v29 = vpop.eup %682 }
  0xbd   : > { %v436_v33 = vmul.f32 %v683_v29, %v430_v27 }
  0xbf   : > { %v437_v41 = vadd.f32 %v436_v33, %v432_v32  ;;  %v438_v42 = vmul.f32 %v436_v33, %v911_v59 }
  0xc1   : > { %v439_v45 = vsub.f32 %v431_v38, %v438_v42  ;;  %v1022_v47 = vrot.slane %v437_v41, %v443_v36 }
  0xc3   : > { %v440_v48 = vadd.f32 %v439_v45, %v433_v44  ;;  %v445_v50 = vmul.f32 %v1022_v47, %v752_v0  ;;  %v446_v51 = vmul.f32 %v1022_v47, %v755_v1  ;;  %v447_v53 = vmul.f32 %v1022_v47, %v758_v2 }
  0xc4   : > { %v448_v59 = vmul.f32 %v1022_v47, %v761_v3  ;;  %v449_v54 = vmul.f32 %v1022_v47, %v770_v7  ;;  %v450_v56 = vmul.f32 %v1022_v47, %v775_v10  ;;  %v451_v57 = vmul.f32 %v1022_v47, %v780_v13 }
  0xc5   : > { %v1038_v60 = vrot.slane %v440_v48, %v443_v36  ;;  %v452_v0 = vmul.f32 %v1022_v47, %v785_v16  ;;  %v453_v1 = vmul.f32 %v1022_v47, %v790_v19  ;;  %v454_v2 = vmul.f32 %v1022_v47, %v795_v22 }
  0xc6   : > { %v455_v3 = vmul.f32 %v1022_v47, %v800_v25  ;;  %v456_v7 = vmul.f32 %v1022_v47, %v805_v28  ;;  %v457_v10 = vmul.f32 %v1022_v47, %v810_v31  ;;  %v458_v13 = vmul.f32 %v1022_v47, %v815_v34 }
  0xc7   : > { %v481_v16 = vadd.f32 %v1038_v60, %v445_v50  ;;  %v482_v19 = vadd.f32 %v1038_v60, %v446_v51  ;;  %v483_v22 = vadd.f32 %v1038_v60, %v447_v53  ;;  %v484_v25 = vadd.f32 %v1038_v60, %v448_v59 }
  0xc8   : > { %v485_v28 = vadd.f32 %v1038_v60, %v449_v54  ;;  %v486_v62 = vadd.f32 %v1038_v60, %v450_v56  ;;  %v487_v31 = vadd.f32 %v1038_v60, %v451_v57  ;;  %v488_v34 = vadd.f32 %v1038_v60, %v452_v0 }
  0xc9   : > { %513 = vst.msk [vmem:[%s1051_s27] sm:$0xff] %vm224_vm0, %v481_v16  ;;  %514 = vst.msk [vmem:[%s1051_s27 + $0x8] sm:$0xff] %vm224_vm0, %v482_v19  ;;  %v489_v63 = vadd.f32 %v1038_v60, %v453_v1  ;;  %v490_v5 = vadd.f32 %v1038_v60, %v454_v2  ;;  %v491_v6 = vadd.f32 %v1038_v60, %v455_v3 }
  0xca   : > { %515 = vst.msk [vmem:[%s1051_s27 + $0x10] sm:$0xff] %vm224_vm0, %v483_v22  ;;  %516 = vst.msk [vmem:[%s1051_s27 + $0x18] sm:$0xff] %vm224_vm0, %v484_v25  ;;  %v492_v9 = vadd.f32 %v1038_v60, %v456_v7  ;;  %v493_v11 = vadd.f32 %v1038_v60, %v457_v10  ;;  %v494_v14 = vadd.f32 %v1038_v60, %v458_v13 }
  0xcb   : > { %517 = vst.msk [vmem:[%s1051_s27 + $0x20] sm:$0xff] %vm224_vm0, %v485_v28  ;;  %518 = vst.msk [vmem:[%s1051_s27 + $0x28] sm:$0xff] %vm224_vm0, %v486_v62  ;;  %v459_v15 = vmul.f32 %v1022_v47, %v820_v37  ;;  %v460_v18 = vmul.f32 %v1022_v47, %v825_v40  ;;  %v461_v20 = vmul.f32 %v1022_v47, %v830_v43 }
  0xcc   : > { %519 = vst.msk [vmem:[%s1051_s27 + $0x30] sm:$0xff] %vm224_vm0, %v487_v31  ;;  %520 = vst.msk [vmem:[%s1051_s27 + $0x38] sm:$0xff] %vm224_vm0, %v488_v34  ;;  %v462_v23 = vmul.f32 %v1022_v47, %v835_v46  ;;  %v463_v37 = vmul.f32 %v1022_v47, %v840_v49  ;;  %v464_v40 = vmul.f32 %v1022_v47, %v845_v52 }
  0xcd   : > { %521 = vst.msk [vmem:[%s1051_s27 + $0x40] sm:$0xff] %vm224_vm0, %v489_v63  ;;  %522 = vst.msk [vmem:[%s1051_s27 + $0x48] sm:$0xff] %vm224_vm0, %v490_v5  ;;  %v495_v24 = vadd.f32 %v1038_v60, %v459_v15  ;;  %v496_v43 = vadd.f32 %v1038_v60, %v460_v18  ;;  %v465_v46 = vmul.f32 %v1022_v47, %v850_v55 }
  0xce   : > { %523 = vst.msk [vmem:[%s1051_s27 + $0x50] sm:$0xff] %vm224_vm0, %v491_v6  ;;  %524 = vst.msk [vmem:[%s1051_s27 + $0x58] sm:$0xff] %vm224_vm0, %v492_v9  ;;  %v466_v49 = vmul.f32 %v1022_v47, %v855_v58  ;;  %v497_v52 = vadd.f32 %v1038_v60, %v461_v20  ;;  %v498_v27 = vadd.f32 %v1038_v60, %v462_v23 }
  0xcf   : > { %525 = vst.msk [vmem:[%s1051_s27 + $0x60] sm:$0xff] %vm224_vm0, %v493_v11  ;;  %526 = vst.msk [vmem:[%s1051_s27 + $0x68] sm:$0xff] %vm224_vm0, %v494_v14  ;;  %v499_v29 = vadd.f32 %v1038_v60, %v463_v37  ;;  %v500_v32 = vadd.f32 %v1038_v60, %v464_v40  ;;  %v501_v33 = vadd.f32 %v1038_v60, %v465_v46 }
  0xd0   : > { %527 = vst.msk [vmem:[%s1051_s27 + $0x70] sm:$0xff] %vm224_vm0, %v495_v24  ;;  %528 = vst.msk [vmem:[%s1051_s27 + $0x78] sm:$0xff] %vm224_vm0, %v496_v43  ;;  %v502_v55 = vadd.f32 %v1038_v60, %v466_v49  ;;  %v467_v58 = vmul.f32 %v1022_v47, %v860_v61  ;;  %v468_v36 = vmul.f32 %v1022_v47, %v865_v4 }
  0xd1   : > { %529 = vst.msk [vmem:[%s1051_s27 + $0x80] sm:$0xff] %vm224_vm0, %v497_v52  ;;  %530 = vst.msk [vmem:[%s1051_s27 + $0x88] sm:$0xff] %vm224_vm0, %v498_v27  ;;  %v469_v38 = vmul.f32 %v1022_v47, %v870_v8  ;;  %v470_v41 = vmul.f32 %v1022_v47, %v875_v12  ;;  %v471_v61 = vmul.f32 %v1022_v47, %v880_v17 }
  0xd2   : > { %531 = vst.msk [vmem:[%s1051_s27 + $0x90] sm:$0xff] %vm224_vm0, %v499_v29  ;;  %532 = vst.msk [vmem:[%s1051_s27 + $0x98] sm:$0xff] %vm224_vm0, %v500_v32  ;;  %v472_v4 = vmul.f32 %v1022_v47, %v885_v21  ;;  %v503_v42 = vadd.f32 %v1038_v60, %v467_v58  ;;  %v504_v8 = vadd.f32 %v1038_v60, %v468_v36 }
  0xd3   : > { %533 = vst.msk [vmem:[%s1051_s27 + $0xa0] sm:$0xff] %vm224_vm0, %v501_v33  ;;  %534 = vst.msk [vmem:[%s1051_s27 + $0xa8] sm:$0xff] %vm224_vm0, %v502_v55  ;;  %v473_v12 = vmul.f32 %v1022_v47, %v890_v26  ;;  %v474_v17 = vmul.f32 %v1022_v47, %v895_v30  ;;  %v505_v21 = vadd.f32 %v1038_v60, %v469_v38 }
  0xd4   : > { %v506_v44 = vadd.f32 %v1038_v60, %v470_v41  ;;  %v507_v45 = vadd.f32 %v1038_v60, %v471_v61  ;;  %v508_v48 = vadd.f32 %v1038_v60, %v472_v4  ;;  %535 = vst.msk [vmem:[%s1051_s27 + $0xb0] sm:$0xff] %vm224_vm0, %v503_v42  ;;  %536 = vst.msk [vmem:[%s1051_s27 + $0xb8] sm:$0xff] %vm224_vm0, %v504_v8 }
  0xd5   : > { %v509_v26 = vadd.f32 %v1038_v60, %v473_v12  ;;  %v510_v50 = vadd.f32 %v1038_v60, %v474_v17  ;;  %v475_v30 = vmul.f32 %v1022_v47, %v900_v35  ;;  %v476_v51 = vmul.f32 %v1022_v47, %v905_v39  ;;  %537 = vst.msk [vmem:[%s1051_s27 + $0xc0] sm:$0xff] %vm224_vm0, %v505_v21 }
  0xd6   : > { %538 = vst.msk [vmem:[%s1051_s27 + $0xc8] sm:$0xff] %vm224_vm0, %v506_v44  ;;  %539 = vst.msk [vmem:[%s1051_s27 + $0xd0] sm:$0xff] %vm224_vm0, %v507_v45 }
  0xd7   : > { %540 = vst.msk [vmem:[%s1051_s27 + $0xd8] sm:$0xff] %vm224_vm0, %v508_v48  ;;  %541 = vst.msk [vmem:[%s1051_s27 + $0xe0] sm:$0xff] %vm224_vm0, %v509_v26  ;;  %v511_v53 = vadd.f32 %v1038_v60, %v475_v30  ;;  %v512_v59 = vadd.f32 %v1038_v60, %v476_v51 }
  0xd8   : > { %542 = vst.msk [vmem:[%s1051_s27 + $0xe8] sm:$0xff] %vm224_vm0, %v510_v50 }
  0xd9   : > { %543 = vst.msk [vmem:[%s1051_s27 + $0xf0] sm:$0xff] %vm224_vm0, %v511_v53  ;;  %544 = vst.msk [vmem:[%s1051_s27 + $0xf8] sm:$0xff] %vm224_vm0, %v512_v59 }
  0xda PF: > { %s12_s11 = sadd.s32 1, %s706_s11   ;;  %s1205_s9 = smov %s702_s10 }
  0xdb   : > { %p9_p5 = scmp.ge.s32.totalorder %s12_s11, 4   ;;  %s1206_s10 = smov %s1208_s12 }
  0xdd   :  { %11 = sbr.rel (!%p9_p5) target bundleno = 2 (0x2), region = 61 }

</bundles_post_ra>
